<compile_context>
chip_gen: v7x
topology: tpu7x:2x2x1
jax: 0.10.0
libtpu: 0.0.40
codegen_flags: <defaults>
</compile_context>

<pallas_src>
import functools

import jax
import jax.numpy as jnp
from jax.experimental import pallas as pl
from jax.experimental.pallas import tpu as pltpu


def _round_up(x, m):
    return ((x + m - 1) // m) * m


def _cdiv(a, b):
    return (a + b - 1) // b


# -----------------------------------------------------------------------------
# Per-generation VMEM budget and row-tile policy
# -----------------------------------------------------------------------------
_VMEM_LIMIT_BYTES = None


def _vmem_limit_bytes():
    """~3/4 of physical VMEM, capped at 96 MiB.
    v7x (64 MiB) -> 48 MiB; v5e/v6e (128 MiB) -> 96 MiB; fallback 48 MiB."""
    global _VMEM_LIMIT_BYTES
    if _VMEM_LIMIT_BYTES is None:
        try:
            cap = int(pltpu.get_tpu_info().vmem_capacity_bytes)
        except Exception:
            cap = 64 * 1024 * 1024
        _VMEM_LIMIT_BYTES = max(32 * 1024 * 1024,
                                min(cap * 3 // 4, 96 * 1024 * 1024))
    return _VMEM_LIMIT_BYTES


def _row_tiling(batch, dp, hp, cp):
    """Pick (TB, Bp, G): TB multiple of 16 (bf16 sublane packing), minimal
    batch padding, >= 2 grid steps when possible (megacore sharding on v7x),
    and a VMEM-aware upper bound on the row tile (<= 1024)."""
    bp = _round_up(batch, 16)
    # rough per-row VMEM bytes: bf16 x / logits tiles (double-buffered) + f32 temps
    per_row = 2 * 2 * dp + 2 * 2 * cp + 4 * hp + 4 * cp + 4
    weight_bytes = 2 * (dp * hp + hp * cp) + 4 * (hp + cp)
    budget = _vmem_limit_bytes() - 2 * weight_bytes - (4 << 20)
    max_tb = max(16, min(1024, (budget // max(per_row, 1)) // 16 * 16))
    g = max(2 if bp > 16 else 1, _cdiv(bp, max_tb))
    tb = _round_up(_cdiv(bp, g), 16)
    bp = _round_up(bp, tb)
    return tb, bp, bp // tb


# -----------------------------------------------------------------------------
# Fused kernel: MLP forward + cross-entropy + top-1 accuracy
# -----------------------------------------------------------------------------
def _fused_kernel(x_ref, w1_ref, b1_ref, w2_ref, b2_ref, lbl_ref,
                  logits_ref, stats_ref, *, num_classes, num_rows, block_rows):
    i = pl.program_id(0)

    # ---- network: Linear -> ReLU -> Linear (bf16 operands, f32 accumulation) ----
    h = jnp.dot(x_ref[...], w1_ref[...], preferred_element_type=jnp.float32)
    h = jnp.maximum(h + b1_ref[...], 0.0)                       # f32 bias + ReLU
    logits = jnp.dot(h.astype(jnp.bfloat16), w2_ref[...],
                     preferred_element_type=jnp.float32)
    logits = logits + b2_ref[...]                               # (TB, Cp) f32
    logits_ref[...] = logits.astype(logits_ref.dtype)           # bf16 lane-dense store

    # ---- criterion + metric on the in-register f32 logits ----
    tb, cp = logits.shape
    cls = jax.lax.broadcasted_iota(jnp.int32, (tb, cp), 1)
    masked = jnp.where(cls < num_classes, logits, jnp.float32(-1e30))

    labels = lbl_ref[...]                                       # (TB, 1) int32, -1 on pad
    m = jnp.max(masked, axis=-1, keepdims=True)
    lse = m + jnp.log(jnp.sum(jnp.exp(masked - m), axis=-1, keepdims=True))
    tgt = jnp.sum(jnp.where(cls == labels, masked, 0.0), axis=-1, keepdims=True)

    # first index attaining the row max (torch.argmax convention)
    pred = jnp.min(jnp.where(masked == m, cls, cp), axis=-1, keepdims=True)

    # mask rows that are padding of the batch dimension
    row = i * block_rows + jax.lax.broadcasted_iota(jnp.int32, (tb, 1), 0)
    valid = (row < num_rows).astype(jnp.float32)

    loss_sum = jnp.sum((lse - tgt) * valid)                            # scalar
    corr_sum = jnp.sum((pred == labels).astype(jnp.float32) * valid)   # scalar

    # one (8,128) stats tile per grid step: [0,0] = block loss sum,
    # [0,1] = block correct count, rest 0  (TB x less writeback than per-row).
    lane = jax.lax.broadcasted_iota(jnp.int32, (8, 128), 1)
    sub = jax.lax.broadcasted_iota(jnp.int32, (8, 128), 0)
    stats_ref[...] = jnp.where((sub == 0) & (lane == 0), loss_sum,
                               jnp.where((sub == 0) & (lane == 1), corr_sum, 0.0))


# -----------------------------------------------------------------------------
# pallas_call wrapper (built once per weight-buffering mode)
# -----------------------------------------------------------------------------
@functools.lru_cache(maxsize=None)
def _build_forward(single_buffer_weights):
    # Weights use a constant index_map (VMEM-resident across the whole grid);
    # Buffered(1) drops the useless second buffer Pallas would allocate.
    wkw = {"pipeline_mode": pl.Buffered(1)} if single_buffer_weights else {}

    @functools.partial(jax.jit, static_argnames=("num_classes",))
    def fwd(x, w1p, b1p, w2p, b2p, labels, *, num_classes):
        B, D = x.shape
        Dp, Hp = w1p.shape
        Cp = w2p.shape[1]

        TB, Bp, G = _row_tiling(B, Dp, Hp, Cp)

        # cast to bf16 BEFORE padding (no padded f32 intermediate in XLA)
        xp = jnp.pad(x.astype(jnp.bfloat16), ((0, Bp - B), (0, Dp - D)))
        lblp = jnp.pad(labels.astype(jnp.int32).reshape(-1, 1),
                       ((0, Bp - B), (0, 0)), constant_values=-1)

        kernel = functools.partial(_fused_kernel, num_classes=num_classes,
                                   num_rows=B, block_rows=TB)

        logits_p, stats = pl.pallas_call(
            kernel,
            out_shape=(jax.ShapeDtypeStruct((Bp, Cp), jnp.bfloat16),
                       jax.ShapeDtypeStruct((8 * G, 128), jnp.float32)),
            grid=(G,),
            in_specs=[
                pl.BlockSpec((TB, Dp), lambda i: (i, 0)),          # activations: tiled on B
                pl.BlockSpec((Dp, Hp), lambda i: (0, 0), **wkw),   # w1: VMEM-resident
                pl.BlockSpec((1, Hp), lambda i: (0, 0), **wkw),    # b1
                pl.BlockSpec((Hp, Cp), lambda i: (0, 0), **wkw),   # w2: VMEM-resident
                pl.BlockSpec((1, Cp), lambda i: (0, 0), **wkw),    # b2
                pl.BlockSpec((TB, 1), lambda i: (i, 0)),           # labels
            ],
            out_specs=(
                pl.BlockSpec((TB, Cp), lambda i: (i, 0)),          # bf16 lane-dense logits
                pl.BlockSpec((8, 128), lambda i: (i, 0)),          # per-block stats tile
            ),
            compiler_params=pltpu.CompilerParams(
                dimension_semantics=("parallel",),                 # shards over TCs on v7x
                vmem_limit_bytes=_vmem_limit_bytes(),
            ),
        )(xp, w1p, b1p, w2p, b2p, lblp)

        # NOTE: bf16 matmuls / bf16 logits storage are a deliberate TPU precision
        # trade-off vs torch's f32 Linear; cast back to f32 for the API surface.
        logits = logits_p[:B, :num_classes].astype(jnp.float32)
        loss = jnp.sum(stats[:, 0]) / B        # only sublane-0 rows are non-zero
        accuracy = jnp.sum(stats[:, 1]) / B
        return logits, loss, accuracy

    return fwd


_BUFFERED1_OK = True  # flipped to False if this jax build rejects pl.Buffered(1)


def _fused_forward(x, w1p, b1p, w2p, b2p, labels, *, num_classes):
    global _BUFFERED1_OK
    Hp, Cp = w2p.shape
    weight_bytes = int(w1p.size) * 2 + int(w2p.size) * 2 + (Hp + Cp) * 4
    # Single-buffer the resident weights only when they are big enough to
    # matter for VMEM (the v7x 64 MiB case); tiny weights use the default path.
    if _BUFFERED1_OK and weight_bytes > (8 << 20):
        try:
            return _build_forward(True)(x, w1p, b1p, w2p, b2p, labels,
                                        num_classes=num_classes)
        except Exception:
            _BUFFERED1_OK = False   # fall back to default double-buffering
    return _build_forward(False)(x, w1p, b1p, w2p, b2p, labels,
                                 num_classes=num_classes)


# -----------------------------------------------------------------------------
# SimpleModel equivalent (eval mode, as set by Model.__init__ -> self.eval())
# -----------------------------------------------------------------------------
class SimpleModelPallas:
    # TODO(synk): cuda()/cpu()/state_dict()/load_state_dict() and the
    # factory-based network/criterion/metric construction are framework
    # plumbing with no kernel equivalent; device placement is handled by JAX.
    def __init__(self, params):
        self.mode = "eval"                       # Model.__init__ calls eval()
        self.criterions = {"train": "cross_entropy", "eval": "cross_entropy"}
        self.metrics = {"train": "accuracy", "eval": "accuracy"}

        w1 = jnp.asarray(params["w1"], jnp.float32)
        b1 = jnp.asarray(params["b1"], jnp.float32).reshape(1, -1)
        w2 = jnp.asarray(params["w2"], jnp.float32)
        b2 = jnp.asarray(params["b2"], jnp.float32).reshape(1, -1)
        self.params = {"w1": w1, "b1": b1, "w2": w2, "b2": b2}

        D, H = w1.shape
        C = w2.shape[1]
        Dp, Hp, Cp = (_round_up(d, 128) for d in (D, H, C))
        self.num_classes = C
        # pad + cast weights to bf16 ONCE (no per-call f32 re-pad / re-cast traffic)
        self._w1p = jnp.pad(w1.astype(jnp.bfloat16), ((0, Dp - D), (0, Hp - H)))
        self._b1p = jnp.pad(b1, ((0, 0), (0, Hp - H)))
        self._w2p = jnp.pad(w2.astype(jnp.bfloat16), ((0, Hp - H), (0, Cp - C)))
        self._b2p = jnp.pad(b2, ((0, 0), (0, Cp - C)))

    def eval(self):
        self.mode = "eval"

    def train(self):
        self.mode = "train"

    def prepare_batch(self, batch):
        # cuda_tf is a no-op under JAX; detach_tf in eval mode == stop_gradient.
        if self.mode == "eval":
            batch = jax.tree_util.tree_map(jax.lax.stop_gradient, batch)
        return batch

    def forward(self, batch):
        batch = self.prepare_batch(batch)
        # network + criterion + metric computed in one fused pallas_call
        logits, loss, acc = _fused_forward(
            batch["data"], self._w1p, self._b1p, self._w2p, self._b2p,
            batch["class_id"], num_classes=self.num_classes)
        out = {"logits": logits}
        if self.mode in self.criterions:
            out["loss"] = loss
        if self.mode in self.metrics:
            out["accuracy"] = acc
        return out

    __call__ = forward


# -----------------------------------------------------------------------------
# Deterministic parameter init + demo
# -----------------------------------------------------------------------------
def init_params(key, d_in, d_hidden, n_classes):
    k1, k2 = jax.random.split(key)
    return {
        "w1": (jax.random.normal(k1, (d_in, d_hidden), jnp.float32)
               / jnp.sqrt(d_in)),
        "b1": jnp.zeros((1, d_hidden), jnp.float32),
        "w2": (jax.random.normal(k2, (d_hidden, n_classes), jnp.float32)
               / jnp.sqrt(d_hidden)),
        "b2": jnp.zeros((1, n_classes), jnp.float32),
    }


if __name__ == "__main__":
    B, D, H, C = 8, 32, 32, 16

    key = jax.random.PRNGKey(0)
    k_data, k_lbl, k_par = jax.random.split(key, 3)

    batch = {
        "data": jax.random.normal(k_data, (B, D), jnp.float32),
        "class_id": jax.random.randint(k_lbl, (B,), 0, C, jnp.int32),
    }
    model = SimpleModelPallas(init_params(k_par, D, H, C))

    out = model(batch)
    out = jax.tree_util.tree_map(jax.block_until_ready, out)

    # pure-JAX reference (same bf16 matmul path) for sanity checking
    p = model.params
    xb = batch["data"].astype(jnp.bfloat16)
    h_ref = jnp.maximum(
        jnp.dot(xb, p["w1"].astype(jnp.bfloat16),
                preferred_element_type=jnp.float32) + p["b1"], 0.0)
    ref_logits = (jnp.dot(h_ref.astype(jnp.bfloat16),
                          p["w2"].astype(jnp.bfloat16),
                          preferred_element_type=jnp.float32) + p["b2"])
    lse_ref = jax.nn.logsumexp(ref_logits, axis=-1)
    ref_loss = jnp.mean(lse_ref - ref_logits[jnp.arange(B), batch["class_id"]])
    ref_acc = jnp.mean(
        (jnp.argmax(ref_logits, axis=-1) == batch["class_id"]).astype(jnp.float32))

    assert out["logits"].shape == (B, C)
    assert out["loss"].shape == ()
    assert out["accuracy"].shape == ()
    assert bool(jnp.isfinite(out["loss"]))
    assert jnp.allclose(out["logits"], ref_logits, atol=5e-2, rtol=5e-2)
    assert jnp.allclose(out["loss"], ref_loss, atol=5e-2, rtol=5e-2)
    assert jnp.allclose(out["accuracy"], ref_acc, atol=1e-6)
    print("KERNEL_OK")
</pallas_src>

<mosaic_0001>
module attributes {stable_mosaic.version = 11 : i64} {
  func.func @_fused_kernel(%arg0: i32, %arg1: memref<16x128xbf16, #tpu.memory_space<vmem>>, %arg2: memref<128x128xbf16, #tpu.memory_space<vmem>>, %arg3: memref<1x128xf32, #tpu.memory_space<vmem>>, %arg4: memref<128x128xbf16, #tpu.memory_space<vmem>>, %arg5: memref<1x128xf32, #tpu.memory_space<vmem>>, %arg6: memref<16x1xi32, #tpu.memory_space<vmem>>, %arg7: memref<16x128xbf16, #tpu.memory_space<vmem>>, %arg8: memref<8x128xf32, #tpu.memory_space<vmem>>) attributes {dimension_semantics = [#tpu.dimension_semantics<parallel>], iteration_bounds = array<i64: 1>, scalar_prefetch = 0 : i64, scratch_operands = 0 : i64, tpu.core_type = #tpu.core_type<tc>, window_params = [{transform_indices = @transform_0, window_bounds = array<i64: 16, 128>}, {pipeline_mode = #tpu.pipeline_mode<synchronous>, transform_indices = @transform_1, window_bounds = array<i64: 128, 128>}, {pipeline_mode = #tpu.pipeline_mode<synchronous>, transform_indices = @transform_2, window_bounds = array<i64: 1, 128>}, {pipeline_mode = #tpu.pipeline_mode<synchronous>, transform_indices = @transform_3, window_bounds = array<i64: 128, 128>}, {pipeline_mode = #tpu.pipeline_mode<synchronous>, transform_indices = @transform_4, window_bounds = array<i64: 1, 128>}, {transform_indices = @transform_5, window_bounds = array<i64: 16, 1>}, {transform_indices = @transform_6, window_bounds = array<i64: 16, 128>}, {transform_indices = @transform_7, window_bounds = array<i64: 8, 128>}]} {
    %c0 = arith.constant 0 : index
    %c0_0 = arith.constant 0 : index
    %0 = vector.load %arg1[%c0, %c0_0] : memref<16x128xbf16, #tpu.memory_space<vmem>>, vector<16x128xbf16>
    %c0_1 = arith.constant 0 : index
    %c0_2 = arith.constant 0 : index
    %1 = vector.load %arg2[%c0_1, %c0_2] : memref<128x128xbf16, #tpu.memory_space<vmem>>, vector<128x128xbf16>
    %cst = arith.constant dense<0.000000e+00> : vector<16x128xf32>
    %2 = tpu.matmul %0, %1, %cst {dimension_numbers = #tpu.dot_dimension_numbers<[1], [0], [0], [1], [0, 0, 1, 1], [], []>} : vector<16x128xbf16>, vector<128x128xbf16>, vector<16x128xf32> -> vector<16x128xf32>
    %c0_3 = arith.constant 0 : index
    %c0_4 = arith.constant 0 : index
    %3 = vector.load %arg3[%c0_3, %c0_4] : memref<1x128xf32, #tpu.memory_space<vmem>>, vector<1x128xf32>
    %4 = vector.broadcast %3 : vector<1x128xf32> to vector<16x128xf32>
    %5 = arith.addf %2, %4 : vector<16x128xf32>
    %cst_5 = arith.constant 0.000000e+00 : f32
    %6 = vector.broadcast %cst_5 : f32 to vector<16x128xf32>
    %7 = arith.maximumf %5, %6 : vector<16x128xf32>
    %8 = arith.truncf %7 : vector<16x128xf32> to vector<16x128xbf16>
    %c0_6 = arith.constant 0 : index
    %c0_7 = arith.constant 0 : index
    %9 = vector.load %arg4[%c0_6, %c0_7] : memref<128x128xbf16, #tpu.memory_space<vmem>>, vector<128x128xbf16>
    %cst_8 = arith.constant dense<0.000000e+00> : vector<16x128xf32>
    %10 = tpu.matmul %8, %9, %cst_8 {dimension_numbers = #tpu.dot_dimension_numbers<[1], [0], [0], [1], [0, 0, 1, 1], [], []>} : vector<16x128xbf16>, vector<128x128xbf16>, vector<16x128xf32> -> vector<16x128xf32>
    %c0_9 = arith.constant 0 : index
    %c0_10 = arith.constant 0 : index
    %11 = vector.load %arg5[%c0_9, %c0_10] : memref<1x128xf32, #tpu.memory_space<vmem>>, vector<1x128xf32>
    %12 = vector.broadcast %11 : vector<1x128xf32> to vector<16x128xf32>
    %13 = arith.addf %10, %12 : vector<16x128xf32>
    %14 = arith.truncf %13 : vector<16x128xf32> to vector<16x128xbf16>
    %c0_11 = arith.constant 0 : index
    %c0_12 = arith.constant 0 : index
    %15 = vector.load %arg7[%c0_11, %c0_12] : memref<16x128xbf16, #tpu.memory_space<vmem>>, vector<16x128xbf16>
    tpu.vector_store %arg7[%c0_11, %c0_12], %14 {strides = array<i32>} : memref<16x128xbf16, #tpu.memory_space<vmem>>, vector<16x128xbf16>,
    %16 = tpu.iota {dimensions = array<i32: 1>} : vector<16x128xi32>
    %c16_i32 = arith.constant 16 : i32
    %17 = vector.broadcast %c16_i32 : i32 to vector<16x128xi32>
    %18 = arith.cmpi slt, %16, %17 : vector<16x128xi32>
    %cst_13 = arith.constant -1.000000e+30 : f32
    %19 = vector.broadcast %cst_13 : f32 to vector<16x128xf32>
    %20 = arith.select %18, %13, %19 : vector<16x128xi1>, vector<16x128xf32>
    %c0_14 = arith.constant 0 : index
    %c0_15 = arith.constant 0 : index
    %21 = vector.load %arg6[%c0_14, %c0_15] : memref<16x1xi32, #tpu.memory_space<vmem>>, vector<16x1xi32>
    %cst_16 = arith.constant dense<0xFF800000> : vector<16xf32>
    %22 = vector.multi_reduction <maximumf>, %20, %cst_16 [1] : vector<16x128xf32> to vector<16xf32>
    %23 = vector.shape_cast %22 : vector<16xf32> to vector<16x1xf32>
    %24 = vector.broadcast %23 : vector<16x1xf32> to vector<16x128xf32>
    %25 = arith.subf %20, %24 : vector<16x128xf32>
    %26 = math.exp %25 : vector<16x128xf32>
    %cst_17 = arith.constant dense<0.000000e+00> : vector<16xf32>
    %27 = vector.multi_reduction <add>, %26, %cst_17 [1] : vector<16x128xf32> to vector<16xf32>
    %28 = vector.shape_cast %27 : vector<16xf32> to vector<16x1xf32>
    %29 = math.log %28 : vector<16x1xf32>
    %30 = arith.addf %23, %29 : vector<16x1xf32>
    %31 = vector.broadcast %21 : vector<16x1xi32> to vector<16x128xi32>
    %32 = arith.cmpi eq, %16, %31 : vector<16x128xi32>
    %cst_18 = arith.constant 0.000000e+00 : f32
    %33 = vector.broadcast %cst_18 : f32 to vector<16x128xf32>
    %34 = arith.select %32, %20, %33 : vector<16x128xi1>, vector<16x128xf32>
    %cst_19 = arith.constant dense<0.000000e+00> : vector<16xf32>
    %35 = vector.multi_reduction <add>, %34, %cst_19 [1] : vector<16x128xf32> to vector<16xf32>
    %36 = vector.shape_cast %35 : vector<16xf32> to vector<16x1xf32>
    %37 = vector.broadcast %23 : vector<16x1xf32> to vector<16x128xf32>
    %38 = arith.cmpf oeq, %20, %37 : vector<16x128xf32>
    %c128_i32 = arith.constant 128 : i32
    %39 = vector.broadcast %c128_i32 : i32 to vector<16x128xi32>
    %40 = arith.select %38, %16, %39 : vector<16x128xi1>, vector<16x128xi32>
    %cst_20 = arith.constant dense<2147483647> : vector<16xi32>
    %41 = vector.multi_reduction <minsi>, %40, %cst_20 [1] : vector<16x128xi32> to vector<16xi32>
    %42 = vector.shape_cast %41 : vector<16xi32> to vector<16x1xi32>
    %c16_i32_21 = arith.constant 16 : i32
    %43 = arith.muli %arg0, %c16_i32_21 : i32
    %44 = tpu.iota {dimensions = array<i32: 0>} : vector<16x1xi32>
    %45 = vector.broadcast %43 : i32 to vector<16x1xi32>
    %46 = arith.addi %45, %44 : vector<16x1xi32>
    %c8_i32 = arith.constant 8 : i32
    %47 = vector.broadcast %c8_i32 : i32 to vector<16x1xi32>
    %48 = arith.cmpi slt, %46, %47 : vector<16x1xi32>
    %49 = arith.extui %48 : vector<16x1xi1> to vector<16x1xi32>
    %50 = arith.sitofp %49 : vector<16x1xi32> to vector<16x1xf32>
    %51 = arith.subf %30, %36 : vector<16x1xf32>
    %52 = arith.mulf %51, %50 : vector<16x1xf32>
    %53 = vector.shape_cast %52 : vector<16x1xf32> to vector<1x16x1xf32>
    %cst_22 = arith.constant dense<0.000000e+00> : vector<1xf32>
    %54 = vector.multi_reduction <add>, %53, %cst_22 [1, 2] : vector<1x16x1xf32> to vector<1xf32>
    %55 = vector.shape_cast %54 : vector<1xf32> to vector<1x1x1xf32>
    %56 = vector.extract %55[0, 0, 0] : f32 from vector<1x1x1xf32>
    %57 = arith.cmpi eq, %42, %21 : vector<16x1xi32>
    %58 = arith.extui %57 : vector<16x1xi1> to vector<16x1xi32>
    %59 = arith.sitofp %58 : vector<16x1xi32> to vector<16x1xf32>
    %60 = arith.mulf %59, %50 : vector<16x1xf32>
    %61 = vector.shape_cast %60 : vector<16x1xf32> to vector<1x16x1xf32>
    %cst_23 = arith.constant dense<0.000000e+00> : vector<1xf32>
    %62 = vector.multi_reduction <add>, %61, %cst_23 [1, 2] : vector<1x16x1xf32> to vector<1xf32>
    %63 = vector.shape_cast %62 : vector<1xf32> to vector<1x1x1xf32>
    %64 = vector.extract %63[0, 0, 0] : f32 from vector<1x1x1xf32>
    %65 = tpu.iota {dimensions = array<i32: 1>} : vector<8x128xi32>
    %66 = tpu.iota {dimensions = array<i32: 0>} : vector<8x128xi32>
    %c0_i32 = arith.constant 0 : i32
    %67 = vector.broadcast %c0_i32 : i32 to vector<8x128xi32>
    %68 = arith.cmpi eq, %66, %67 : vector<8x128xi32>
    %c0_i32_24 = arith.constant 0 : i32
    %69 = vector.broadcast %c0_i32_24 : i32 to vector<8x128xi32>
    %70 = arith.cmpi eq, %65, %69 : vector<8x128xi32>
    %71 = arith.andi %68, %70 : vector<8x128xi1>
    %c0_i32_25 = arith.constant 0 : i32
    %72 = vector.broadcast %c0_i32_25 : i32 to vector<8x128xi32>
    %73 = arith.cmpi eq, %66, %72 : vector<8x128xi32>
    %c1_i32 = arith.constant 1 : i32
    %74 = vector.broadcast %c1_i32 : i32 to vector<8x128xi32>
    %75 = arith.cmpi eq, %65, %74 : vector<8x128xi32>
    %76 = arith.andi %73, %75 : vector<8x128xi1>
    %cst_26 = arith.constant 0.000000e+00 : f32
    %77 = vector.broadcast %64 : f32 to vector<8x128xf32>
    %78 = vector.broadcast %cst_26 : f32 to vector<8x128xf32>
    %79 = arith.select %76, %77, %78 : vector<8x128xi1>, vector<8x128xf32>
    %80 = vector.broadcast %56 : f32 to vector<8x128xf32>
    %81 = arith.select %71, %80, %79 : vector<8x128xi1>, vector<8x128xf32>
    %c0_27 = arith.constant 0 : index
    %c0_28 = arith.constant 0 : index
    %82 = vector.load %arg8[%c0_27, %c0_28] : memref<8x128xf32, #tpu.memory_space<vmem>>, vector<8x128xf32>
    tpu.vector_store %arg8[%c0_27, %c0_28], %81 {strides = array<i32>} : memref<8x128xf32, #tpu.memory_space<vmem>>, vector<8x128xf32>,
    return
  }
  func.func @transform_0(%arg0: i32) -> (i32, i32) {
    %c0_i32 = arith.constant 0 : i32
    %c0_i32_0 = arith.constant 0 : i32
    return %arg0, %c0_i32 : i32, i32
  }
  func.func @transform_1(%arg0: i32) -> (i32, i32) {
    %c0_i32 = arith.constant 0 : i32
    %c0_i32_0 = arith.constant 0 : i32
    %c0_i32_1 = arith.constant 0 : i32
    return %c0_i32, %c0_i32_0 : i32, i32
  }
  func.func @transform_2(%arg0: i32) -> (i32, i32) {
    %c0_i32 = arith.constant 0 : i32
    %c0_i32_0 = arith.constant 0 : i32
    %c0_i32_1 = arith.constant 0 : i32
    return %c0_i32, %c0_i32_0 : i32, i32
  }
  func.func @transform_3(%arg0: i32) -> (i32, i32) {
    %c0_i32 = arith.constant 0 : i32
    %c0_i32_0 = arith.constant 0 : i32
    %c0_i32_1 = arith.constant 0 : i32
    return %c0_i32, %c0_i32_0 : i32, i32
  }
  func.func @transform_4(%arg0: i32) -> (i32, i32) {
    %c0_i32 = arith.constant 0 : i32
    %c0_i32_0 = arith.constant 0 : i32
    %c0_i32_1 = arith.constant 0 : i32
    return %c0_i32, %c0_i32_0 : i32, i32
  }
  func.func @transform_5(%arg0: i32) -> (i32, i32) {
    %c0_i32 = arith.constant 0 : i32
    %c0_i32_0 = arith.constant 0 : i32
    return %arg0, %c0_i32 : i32, i32
  }
  func.func @transform_6(%arg0: i32) -> (i32, i32) {
    %c0_i32 = arith.constant 0 : i32
    %c0_i32_0 = arith.constant 0 : i32
    return %arg0, %c0_i32 : i32, i32
  }
  func.func @transform_7(%arg0: i32) -> (i32, i32) {
    %c0_i32 = arith.constant 0 : i32
    %c0_i32_0 = arith.constant 0 : i32
    return %arg0, %c0_i32 : i32, i32
  }
}

</mosaic_0001>

<bundles_post_ra>
// kernel: fwd.1
= control target key start
LH: loop header
LB: loop body
LE: loop exit
PB: predicated region body
PF: predicated region fallthrough
CT: control target
= control target key end

     0   :  { %13 = vsyncpa [#allocation3], 0  ;;  %s576_s24 = smov [#allocation2]   ;;  %s719_s0 = inlined_call_operand.vmem [shape: bf16[16,128], index: 0, kind: input, shape index: {}]   ;;  %s720_s1 = inlined_call_operand.vmem [shape: bf16[128,128], index: 1, kind: input, shape index: {}]   ;;  %s721_s2 = inlined_call_operand.vmem [shape: f32[1,128], index: 2, kind: input, shape index: {}]   ;;  %s722_s3 = inlined_call_operand.hbm [shape: bf16[128,128], index: 3, kind: input, shape index: {}]   ;;  %s723_s4 = inlined_call_operand.vmem [shape: f32[1,128], index: 4, kind: input, shape index: {}]   ;;  %s724_s5 = inlined_call_operand.vmem [shape: s32[16,1], index: 5, kind: input, shape index: {}]   ;;  %s725_s6 = inlined_call_operand.vmem [shape: bf16[16,128], index: 6, kind: output, shape index: {0}]   ;;  %s726_s7 = inlined_call_operand.vmem [shape: f32[8,128], index: 7, kind: output, shape index: {1}]  }
   0x1   :  { %s25_s25 = sshll.u32 %s576_s24, 4  ;;  %s552_s28 = scalar_lea.hbm %s722_s3, 1024  ;;  %s26_s25 = int_to_ptr.vmem [resolvable:$true] %s25_s25 }
   0x2   :  { %p553_p0 = scmp.ne.s32.totalorder %s722_s3, %s552_s28  ;;  %p556_p1 = scmp.lt.u32.totalorder %s552_s28, %s722_s3 }
   0x4   :  { %p558_p2 = pnand %p556_p1, %p553_p0 }
   0x6   :  { %561 = shalt.err (!%p558_p2)
}
   0x7   :  { %s562_s10 = scalar_lea.vmem %s26_s25, 1024  ;;  %p567_p4 = scmp.lt.s32.totalorder %s26_s25, %s26_s25 }
   0x8   :  { %p563_p3 = scmp.ne.s32.totalorder %s26_s25, %s562_s10  ;;  %p568_p5 = scmp.lt.s32.totalorder %s562_s10, %s562_s10 }
   0xa   :  { %p569_p6 = por %p568_p5, %p567_p4 }
   0xc   :  { %p570_p7 = pnand %p569_p6, %p563_p3 }
   0xe   :  { %573 = shalt.err (!%p570_p7)
}
   0xf   :  { %s577_s11 = smov 64   ;;  %s578_s12 = smov 4  }
  0x10   :  { %31 = dma.hbm_to_vmem [thread:$0]  %s722_s3, 1024, %s26_s25, [#allocation3], %s577_s11, %s577_s11, %s578_s12  }
  0x11   :  { %574 = dma.done.wait [#allocation3], 1024  }
  0x12   :  { %575 = vsyncadd [#allocation3], 4294966272  ;;  %v579_v0 = vmov 0.0   ;;  %vm580_vm0 = vmmov 0   ;;  %v527_v1 = vld [vmem:[%s720_s1] sm:$0xff]   ;;  %v528_v2 = vld [vmem:[%s720_s1 + $0x8] sm:$0xff]   ;;  %v285_v29 = vlaneseq }
  0x13   :  { %475 = vmatprep.subr.bf16.mxu0 %v579_v0  ;;  %491 = vmatprep.mubr.msk.bf16.mxu0 %vm580_vm0, %v579_v0  ;;  %v529_v3 = vld [vmem:[%s720_s1 + $0x10] sm:$0xff]   ;;  %v536_v4 = vld [vmem:[#allocation2] sm:$0xff]   ;;  %v530_v5 = vld [vmem:[%s720_s1 + $0x18] sm:$0xff]   ;;  %v581_v28 = vmov 0   ;;  %vm375_vm10 = vcmask 7168  }
  0x14   :  { %495 = vmatprep.subr.bf16.mxu1 %v579_v0  ;;  %511 = vmatprep.mubr.msk.bf16.mxu1 %vm580_vm0, %v579_v0  ;;  %v537_v6 = vld [vmem:[#allocation2 + $0x8] sm:$0xff]   ;;  %v531_v7 = vld [vmem:[%s720_s1 + $0x20] sm:$0xff]   ;;  %v538_v8 = vld [vmem:[#allocation2 + $0x10] sm:$0xff]   ;;  %v686_v32 = vand.u32 127, %v285_v29 }
  0x15   :  { %476 = vmatpush3.bf16.msra.mxu0 %v527_v1  ;;  %496 = vmatpush3.bf16.msra.mxu1 %v536_v4  ;;  %v532_v9 = vld [vmem:[%s720_s1 + $0x28] sm:$0xff]   ;;  %v539_v10 = vld [vmem:[#allocation2 + $0x18] sm:$0xff]   ;;  %v533_v11 = vld [vmem:[%s720_s1 + $0x30] sm:$0xff]  }
  0x16   :  { %477 = vmatprep.subr.bf16.mxu0 %v579_v0  ;;  %497 = vmatprep.subr.bf16.mxu1 %v579_v0  ;;  %v540_v12 = vld [vmem:[#allocation2 + $0x20] sm:$0xff]   ;;  %v534_v13 = vld [vmem:[%s720_s1 + $0x38] sm:$0xff]   ;;  %v541_v14 = vld [vmem:[#allocation2 + $0x28] sm:$0xff]   ;;  %vm287_vm1 = vcmp.lt.s32.totalorder %v686_v32, 16  ;;  %vm411_vm12 = vcmp.eq.s32.totalorder %v686_v32, 1  ;;  %vm409_vm13 = vcmp.eq.s32.totalorder %v686_v32, 0 }
  0x17   :  { %v535_v15 = vld [vmem:[%s719_s0] sm:$0xff]   ;;  %v542_v16 = vld [vmem:[#allocation2 + $0x30] sm:$0xff]   ;;  %v543_v17 = vld [vmem:[#allocation2 + $0x38] sm:$0xff]   ;;  %525 = vset.pattern.permute.xlu0 %v581_v28  ;;  %526 = vset.pattern.permute.xlu1 %v581_v28 }
  0x18   :  { %v427_v18 = vld [vmem:[%s721_s2] ss:$0 sm:$0xff]  ;;  %v695_v41 = vld [vmem:[%s724_s5 + $0x8] sm:$0xff] }
  0x19   :  { %478 = vmatpush3.bf16.msra.mxu0 %v528_v2  ;;  %498 = vmatpush3.bf16.msra.mxu1 %v537_v6  ;;  %v437_v30 = vld [vmem:[%s723_s4] ss:$0 sm:$0xff] }
  0x1a   :  { %479 = vmatprep.subr.bf16.mxu0 %v579_v0  ;;  %499 = vmatprep.subr.bf16.mxu1 %v579_v0  ;;  %v290_v53 = vld [vmem:[%s724_s5] sm:$0xff] }
  0x1d   :  { %480 = vmatpush3.bf16.msra.mxu0 %v529_v3  ;;  %500 = vmatpush3.bf16.msra.mxu1 %v538_v8 }
  0x1e   :  { %481 = vmatprep.subr.bf16.mxu0 %v579_v0  ;;  %501 = vmatprep.subr.bf16.mxu1 %v579_v0 }
  0x21   :  { %482 = vmatpush3.bf16.msra.mxu0 %v530_v5  ;;  %502 = vmatpush3.bf16.msra.mxu1 %v539_v10 }
  0x22   :  { %483 = vmatprep.subr.bf16.mxu0 %v579_v0  ;;  %503 = vmatprep.subr.bf16.mxu1 %v579_v0 }
  0x25   :  { %484 = vmatpush3.bf16.msra.mxu0 %v531_v7  ;;  %504 = vmatpush3.bf16.msra.mxu1 %v540_v12 }
  0x26   :  { %485 = vmatprep.subr.bf16.mxu0 %v579_v0  ;;  %505 = vmatprep.subr.bf16.mxu1 %v579_v0 }
  0x29   :  { %486 = vmatpush3.bf16.msra.mxu0 %v532_v9  ;;  %506 = vmatpush3.bf16.msra.mxu1 %v541_v14 }
  0x2a   :  { %487 = vmatprep.subr.bf16.mxu0 %v579_v0  ;;  %507 = vmatprep.subr.bf16.mxu1 %v579_v0 }
  0x2d   :  { %488 = vmatpush3.bf16.msra.mxu0 %v533_v11  ;;  %508 = vmatpush3.bf16.msra.mxu1 %v542_v16 }
  0x2e   :  { %489 = vmatprep.subr.bf16.mxu0 %v579_v0  ;;  %509 = vmatprep.subr.bf16.mxu1 %v579_v0 }
  0x31   :  { %490 = vmatpush3.bf16.msra.mxu0 %v534_v13  ;;  %510 = vmatpush3.bf16.msra.mxu1 %v543_v17 }
  0x34   :  { %492 = vmatmul.mubr.bf16.vlgmr.msra.gmra.mrb[0].mxu0 %v535_v15 }
 0x107   :  { %v153_v19 = vpop.f32.mrb[0].mxu0 }
 0x108   :  { %v154_v20 = vadd.f32 %v427_v18, %v153_v19  ;;  %v493_v21 = vpop.f32.mrb[1].mxu0 }
 0x109   :  { %v156_v22 = vpop.f32.mrb[2].mxu0 }
 0x10a   :  { %v157_v23 = vadd.f32 %v427_v18, %v156_v22  ;;  %v494_v24 = vpop.f32.mrb[3].mxu0  ;;  %v160_v25 = vmax.f32 %v154_v20, 0.0 }
 0x10c   :  { %v161_v26 = vmax.f32 %v157_v23, 0.0 }
 0x10e   :  { %v162_v27 = vpack.c.bf16 %v161_v26, %v160_v25 }
 0x110   :  { %512 = vmatmul.mubr.bf16.vlgmr.msra.gmra.mrb[0].mxu1 %v162_v27 }
 0x1e3   :  { %v268_v31 = vpop.f32.mrb[0].mxu1 }
 0x1e4   :  { %v513_v33 = vpop.f32.mrb[1].mxu1  ;;  %v269_v35 = vadd.f32 %v437_v30, %v268_v31 }
 0x1e5   :  { %v271_v34 = vpop.f32.mrb[2].mxu1 }
 0x1e6   :  { %v272_v36 = vadd.f32 %v437_v30, %v271_v34  ;;  %v514_v37 = vpop.f32.mrb[3].mxu1  ;;  %v288_v40 = vsel %vm287_vm1, %v269_v35, -1e+30 }
 0x1e8   :  { %v455_v38 = vpack.c.bf16 %v272_v36, %v269_v35  ;;  %v289_v39 = vsel %vm287_vm1, %v272_v36, -1e+30 }
 0x1e9   :  { %294 = vmax.xlane.f32.xlu0 %v289_v39 }
 0x1ea   :  { %456 = vst [vmem:[%s725_s6] sm:$0xff] %v455_v38  }
 0x1ed   :  { %292 = vmax.xlane.f32.xlu0 %v288_v40 }
 0x203   :  { %316 = vperm.xlu0 %525, %v695_v41  }
 0x276   :  { %v295_v42 = vpop.xlane.xlu0 %294 }
 0x277   :  { %vm327_vm2 = vcmp.eq.f32.partialorder %v289_v39, %v295_v42  ;;  %v297_v54 = vsub.f32 %v289_v39, %v295_v42 }
 0x278   :  { %v329_v46 = vsel %vm327_vm2, %v686_v32, 128 }
 0x279   :  { %v345_v50 = vshra.s32 %v329_v46, 16  ;;  %v300_v55 = vmul.f32 1.442695, %v297_v54  ;;  %v344_v60 = vand.u32 65535, %v329_v46 }
 0x27a   :  { %v698_v43 = vpop.xlane.xlu0 %292 }
 0x27b   :  { %v296_v44 = vsub.f32 %v288_v40, %v698_v43  ;;  %vm326_vm3 = vcmp.eq.f32.partialorder %v288_v40, %v698_v43  ;;  %v347_v51 = vcvt.s32.f32 %v345_v50  ;;  %v346_v1 = vcvt.s32.f32 %v344_v60 }
 0x27c   :  { %v328_v45 = vsel %vm326_vm3, %v686_v32, 128 }
 0x27d   :  { %v298_v47 = vmul.f32 1.442695, %v296_v44  ;;  %v331_v48 = vshra.s32 %v328_v45, 16  ;;  %v330_v57 = vand.u32 65535, %v328_v45 }
 0x27f   :  { %544 = vpow2.f32 %v298_v47  ;;  %v333_v49 = vcvt.s32.f32 %v331_v48  ;;  %v332_v59 = vcvt.s32.f32 %v330_v57 }
 0x280   :  { %546 = vpow2.f32 %v300_v55 }
 0x281   :  { %334 = vmin.xlane.f32.xlu1 %v333_v49 }
 0x282   :  { %v317_v62 = vpop.permute.xlu0 %316 }
 0x283   :  { %vm319_vm6 = vcmp.eq.s32.totalorder %v686_v32, %v317_v62 }
 0x284   :  { %v321_v4 = vsel %vm319_vm6, %v289_v39, 0.0 }
 0x285   :  { %348 = vmin.xlane.f32.xlu1 %v347_v51 }
 0x289   :  { %v545_v52 = vpop.eup %544 }
 0x28a   :  { %302 = vadd.xlane.f32.xlu0 %v545_v52  ;;  %v547_v56 = vpop.eup %546 }
 0x296   :  { %313 = vperm.xlu1 %526, %v290_v53  }
 0x2ba   :  { %304 = vadd.xlane.f32.xlu1 %v547_v56 }
 0x30e   :  { %v335_v58 = vpop.xlane.xlu1 %334 }
 0x30f   :  { %vm336_vm4 = vcmp.eq.f32.partialorder %v333_v49, %v335_v58  ;;  %v341_v8 = vcvt.f32.s32 %v335_v58 }
 0x310   :  { %v337_v61 = vsel %vm336_vm4, %v332_v59, inf }
 0x311   :  { %338 = vmin.xlane.f32.xlu1 %v337_v61  ;;  %v342_v11 = vshll.u32 %v341_v8, 16 }
 0x312   :  { %v349_v63 = vpop.xlane.xlu1 %348 }
 0x313   :  { %vm350_vm5 = vcmp.eq.f32.partialorder %v347_v51, %v349_v63  ;;  %v355_v12 = vcvt.f32.s32 %v349_v63 }
 0x314   :  { %v351_v2 = vsel %vm350_vm5, %v346_v1, inf }
 0x315   :  { %352 = vmin.xlane.f32.xlu1 %v351_v2  ;;  %v356_v18 = vshll.u32 %v355_v12, 16 }
 0x316   :  { %v314_v3 = vpop.permute.xlu1 %313 }
 0x317   :  { %vm318_vm7 = vcmp.eq.s32.totalorder %v686_v32, %v314_v3  ;;  %v303_v7 = vpop.xlane.xlu0 %302 }
 0x318   :  { %v320_v5 = vsel %vm318_vm7, %v288_v40, 0.0 }
 0x319   :  { %324 = vadd.xlane.f32.xlu1 %v321_v4 }
 0x31d   :  { %322 = vadd.xlane.f32.xlu1 %v320_v5 }
 0x347   :  { %v305_v6 = vpop.xlane.xlu1 %304 }
 0x348   :  { %548 = vlog2.f32 %v305_v6 }
 0x349   :  { %550 = vlog2.f32 %v303_v7 }
 0x352   :  { %v549_v9 = vpop.eup %548 }
 0x353   :  { %v309_v14 = vmul.f32 0.6931472, %v549_v9  ;;  %v551_v16 = vpop.eup %550 }
 0x354   :  { %v307_v20 = vmul.f32 0.6931472, %v551_v16 }
 0x355   :  { %v311_v22 = vadd.f32 %v309_v14, %v295_v42 }
 0x356   :  { %v310_v28 = vadd.f32 %v307_v20, %v698_v43 }
 0x39e   :  { %v339_v10 = vpop.xlane.xlu1 %338 }
 0x39f   :  { %v340_v13 = vcvt.f32.s32 %v339_v10 }
 0x3a1   :  { %v343_v15 = vadd.s32 %v342_v11, %v340_v13 }
 0x3a2   :  { %v353_v17 = vpop.xlane.xlu1 %352 }
 0x3a3   :  { %v354_v19 = vcvt.f32.s32 %v353_v17  ;;  %vm388_vm8 = vcmp.eq.s32.totalorder %v343_v15, %v290_v53  ;;  %v360_v53 = vshrl.u32 %v285_v29, 7 }
 0x3a4   :  { %v448_v25 = vsel %vm388_vm8, 1.0, %v579_v0 }
 0x3a5   :  { %v357_v21 = vadd.s32 %v356_v18, %v354_v19  ;;  %v396_v34 = vsel %vm375_vm10, %v448_v25, 0.0  ;;  %vm408_vm11 = vcmp.eq.s32.totalorder %v360_v53, 0 }
 0x3a6   :  { %v325_v23 = vpop.xlane.xlu1 %324  ;;  %vm412_vm14 = vmand %vm408_vm11, %vm411_vm12 }
 0x3a7   :  { %vm389_vm9 = vcmp.eq.s32.totalorder %v357_v21, %v695_v41  ;;  %v372_v24 = vsub.f32 %v311_v22, %v325_v23  ;;  %vm410_vm15 = vmand %vm408_vm11, %vm409_vm13 }
 0x3a8   :  { %v449_v26 = vsel %vm389_vm9, 1.0, %v579_v0 }
 0x3a9   :  { %v374_v27 = vmul.f32 0.0, %v372_v24  ;;  %v395_v30 = vmul.f32 0.0, %v449_v26 }
 0x3aa   :  { %v323_v31 = vpop.xlane.xlu1 %322 }
 0x3ab   :  { %v371_v33 = vsub.f32 %v310_v28, %v323_v31  ;;  %v397_v35 = vsel %vm375_vm10, %v395_v30, 0.0  ;;  %v377_v38 = vsel %vm375_vm10, %v374_v27, 0.0 }
 0x3ac   :  { %v398_v36 = vadd.f32 %v397_v35, %v396_v34 }
 0x3ad   :  { %v376_v37 = vsel %vm375_vm10, %v371_v33, 0.0 }
 0x3ae   :  { %v378_v39 = vadd.f32 %v377_v38, %v376_v37 }
 0x3b0   :  { %379 = vadd.xlane.f32.xlu1 %v378_v39 }
 0x3b4   :  { %399 = vadd.xlane.f32.xlu1 %v398_v36 }
 0x43d   :  { %v380_v40 = vpop.xlane.xlu1 %379 }
 0x43e   :  { %v381_v41 = vrot.slane %v380_v40, 4 }
 0x440   :  { %v382_v42 = vadd.f32 %v381_v41, %v380_v40 }
 0x441   :  { %v400_v44 = vpop.xlane.xlu1 %399 }
 0x442   :  { %v383_v45 = vrot.slane %v382_v42, 2  ;;  %v401_v0 = vrot.slane %v400_v44, 4 }
 0x444   :  { %v402_v46 = vadd.f32 %v401_v0, %v400_v44  ;;  %v384_v47 = vadd.f32 %v383_v45, %v382_v42 }
 0x446   :  { %v403_v43 = vrot.slane %v402_v46, 2  ;;  %v385_v48 = vrot.slane %v384_v47, 1 }
 0x448   :  { %v404_v49 = vadd.f32 %v403_v43, %v402_v46  ;;  %v386_v50 = vadd.f32 %v385_v48, %v384_v47 }
 0x44a   :  { %515 = vpush %v386_v50  ;;  %v405_v51 = vrot.slane %v404_v49, 1 }
 0x44c   :  { %v406_v52 = vadd.f32 %v405_v51, %v404_v49 }
 0x44e   :  { %517 = vpush %v406_v52 }
 0x47b   :  { %s516_s5 = spop %515 }
 0x47c   :  { %v415_v55 = vstv %s516_s5 }
 0x47f   :  { %s518_s14 = spop %517 }
 0x480   :  { %v413_v54 = vstv %s518_s14 }
 0x481   :  { %v414_v56 = vsel %vm412_vm14, %v413_v54, 0.0 }
 0x482   :  { %v416_v57 = vsel %vm410_vm15, %v415_v55, %v414_v56 }
 0x483   :  { %417 = vst [vmem:[%s726_s7] sm:$0xff] %v416_v57 }
 0x484   :  { %426 = vsyncpa [#allocation3], 1 }

</bundles_post_ra>
